<compile_context>
chip_gen: v6e
topology: v6e:2x2x1
jax: 0.10.0
libtpu: 0.0.40
codegen_flags: <defaults>
</compile_context>

<pallas_src>
import jax
import jax.numpy as jnp
from jax.experimental import pallas as pl
from jax.experimental.pallas import tpu as pltpu


def _affine_fma_kernel(x_ref, mult_ref, add_ref, o_ref):
    # Single elementwise FMA.  mult/add are (1, Dp) f32 and broadcast over the
    # sublane (row) axis; result cast back to the input dtype on store.
    o_ref[...] = (x_ref[...] * mult_ref[...] + add_ref[...]).astype(o_ref.dtype)


def _round_up(x, m):
    return ((x + m - 1) // m) * m


def _run_affine(inputs, mult, add, *, min_pallas_elems=256 * 1024):
    """Compute y = inputs * mult + add with a tiled, pipelined Pallas kernel.

    inputs: [B, D];  mult, add: [1, D] (kept f32) broadcast over the batch axis.
    """
    B, D = inputs.shape
    dtype = inputs.dtype
    itemsize = jnp.dtype(dtype).itemsize

    mult = mult.astype(jnp.float32)
    add = add.astype(jnp.float32)

    # ---- small-problem bypass ------------------------------------------------
    # For tiny inputs the pallas_call launch + layout plumbing dominate; XLA
    # fuses this FMA anyway.
    if B * D < min_pallas_elems:
        return (inputs * mult + add).astype(dtype)

    # ---- lane-dense layout (wrapper-side plumbing only) -----------------------
    k = 1
    col_pad = 0
    if D % 128 == 0:
        Dp = D
    elif D < 128 and 128 % D == 0:
        # Fold k batch rows into one 128-lane packed row.
        k = 128 // D
        Dp = 128
    else:
        # Pad the feature axis to the next multiple of 128 so stores are
        # unmasked (lane-dense); padded lanes are sliced off afterwards.
        Dp = _round_up(D, 128)
        col_pad = Dp - D

    if k > 1:
        mult_p = jnp.tile(mult, (1, k))
        add_p = jnp.tile(add, (1, k))
    elif col_pad:
        mult_p = jnp.pad(mult, ((0, 0), (0, col_pad)), constant_values=1.0)
        add_p = jnp.pad(add, ((0, 0), (0, col_pad)))
    else:
        mult_p, add_p = mult, add

    x = inputs
    row_pad = 0
    if k > 1:
        row_pad = (-B) % k              # only k-alignment pad (<= k-1 rows)
        if row_pad:
            x = jnp.pad(x, ((0, row_pad), (0, 0)))
        bp = (B + row_pad) // k
        x = x.reshape(bp, Dp)
    else:
        bp = B
        if col_pad:
            x = jnp.pad(x, ((0, 0), (0, col_pad)))

    # ---- tile sizing -----------------------------------------------------------
    sub = max(8, 32 // itemsize)            # native sublane tile: 8 f32 / 16 bf16 / 32 i8
    target_in_bytes = 2 * 1024 * 1024       # ~2 MiB input tile -> near HBM roofline
    max_rows = max(sub, target_in_bytes // (Dp * itemsize))
    tb = min(max_rows, _round_up(bp, sub))
    tb = max(sub, (tb // sub) * sub)
    if bp > sub and tb >= bp:
        # Keep at least 2 grid steps so v7x megacore can shard the batch axis.
        tb = max(sub, _round_up(-(-bp // 2), sub))
    grid = (pl.cdiv(bp, tb),)               # ragged last block masked by Pallas

    tile_bytes = tb * Dp * itemsize
    # ~2x(in tile) + 2x(out tile) double-buffered + tiny f32 mult/add blocks.
    vmem_needed = 4 * tile_bytes + 4 * Dp * 4
    vmem_limit = int(min(64 * 1024 * 1024,
                         max(16 * 1024 * 1024, vmem_needed + (4 << 20))))

    out = pl.pallas_call(
        _affine_fma_kernel,
        out_shape=jax.ShapeDtypeStruct((bp, Dp), dtype),
        grid=grid,
        in_specs=[
            pl.BlockSpec((tb, Dp), lambda i: (i, 0)),
            pl.BlockSpec((1, Dp), lambda i: (0, 0)),
            pl.BlockSpec((1, Dp), lambda i: (0, 0)),
        ],
        out_specs=pl.BlockSpec((tb, Dp), lambda i: (i, 0)),
        compiler_params=pltpu.CompilerParams(
            dimension_semantics=("parallel",),
            vmem_limit_bytes=vmem_limit),
    )(x, mult_p, add_p)

    if k > 1:
        out = out.reshape(bp * k, D)
        if row_pad:
            out = out[:B]
    elif col_pad:
        out = out[:, :D]
    return out


class Transform:
    """JAX/Pallas analogue of nnrl Transform wrapping an affine cond_transform.

    params: {"loc": [D], "scale": [D]}  (deterministically initialized).
    __call__(inputs, reverse=False) -> (transformed, log_det_jacobian)
    """

    def __init__(self, params, event_dim=1):
        self.event_dim = event_dim
        self.params = params
        loc = params["loc"].reshape(1, -1).astype(jnp.float32)
        scale = params["scale"].reshape(1, -1).astype(jnp.float32)
        # Encode params (x = z * scale + loc).
        self._loc = loc
        self._scale = scale
        # Decode params precomputed once so the kernel is a single FMA
        # (no per-element divide): z = x * (1/scale) + (-loc/scale).
        self._inv_scale = 1.0 / scale
        self._neg_loc_inv = -loc * self._inv_scale
        # Param-only log-det hoisted out of the kernel entirely.
        self._log_det = jnp.sum(jnp.log(jnp.abs(scale)))

    def __call__(self, inputs, reverse: bool = False):
        return self.decode(inputs) if reverse else self.encode(inputs)

    def encode(self, inputs):
        x = _run_affine(inputs, self._scale, self._loc)
        ldj = jnp.full((inputs.shape[0],), self._log_det, dtype=jnp.float32)
        return x, ldj

    def decode(self, inputs):
        z = _run_affine(inputs, self._inv_scale, self._neg_loc_inv)
        ldj = jnp.full((inputs.shape[0],), -self._log_det, dtype=jnp.float32)
        return z, ldj


if __name__ == "__main__":

    def _check(B, D, key):
        kz, kl, ks = jax.random.split(key, 3)
        # Deterministic synthetic parameters (no checkpoint loading).
        loc = jax.random.normal(kl, (D,), dtype=jnp.float32) * 0.1
        scale = 1.0 + 0.5 * jax.random.uniform(ks, (D,), dtype=jnp.float32)
        transform = Transform({"loc": loc, "scale": scale}, event_dim=1)

        z = jax.random.normal(kz, (B, D), dtype=jnp.float32)
        # encode: z -> x
        x, ldj_fwd = transform(z, reverse=False)
        # decode: x -> z (should round-trip)
        z_rec, ldj_inv = transform(x, reverse=True)
        jax.block_until_ready((x, ldj_fwd, z_rec, ldj_inv))

        # Reference checks against plain JAX.
        x_ref = z * scale[None, :] + loc[None, :]
        ldj_ref = jnp.sum(jnp.log(jnp.abs(scale)))
        assert x.shape == (B, D) and z_rec.shape == (B, D)
        assert jnp.allclose(x, x_ref, atol=1e-5, rtol=1e-5)
        assert jnp.allclose(ldj_fwd, jnp.full((B,), ldj_ref), atol=1e-5, rtol=1e-5)
        assert jnp.allclose(z_rec, z, atol=1e-4, rtol=1e-4)
        assert jnp.allclose(ldj_inv, -ldj_fwd, atol=1e-5, rtol=1e-5)

    key = jax.random.PRNGKey(0)
    k0, k1, k2 = jax.random.split(key, 3)

    # Small shape consistent with a flow transform (small-problem bypass path).
    _check(2, 32, k0)
    # Moderate shapes that exercise the Pallas kernel paths:
    _check(8194, 32, k1)   # lane packing (k=4), k-alignment pad, ragged last tile
    _check(2048, 200, k2)  # lane padding 200 -> 256, 2-step parallel grid

    print("KERNEL_OK")
</pallas_src>

<mosaic_0001>
module attributes {stable_mosaic.version = 11 : i64} {
  func.func @_affine_fma_kernel(%arg0: i32, %arg1: memref<1032x128xf32, #tpu.memory_space<vmem>>, %arg2: memref<1x128xf32, #tpu.memory_space<vmem>>, %arg3: memref<1x128xf32, #tpu.memory_space<vmem>>, %arg4: memref<1032x128xf32, #tpu.memory_space<vmem>>) attributes {dimension_semantics = [#tpu.dimension_semantics<parallel>], iteration_bounds = array<i64: 2>, scalar_prefetch = 0 : i64, scratch_operands = 0 : i64, tpu.core_type = #tpu.core_type<tc>, window_params = [{transform_indices = @transform_0, window_bounds = array<i64: 1032, 128>}, {pipeline_mode = #tpu.pipeline_mode<synchronous>, transform_indices = @transform_1, window_bounds = array<i64: 1, 128>}, {pipeline_mode = #tpu.pipeline_mode<synchronous>, transform_indices = @transform_2, window_bounds = array<i64: 1, 128>}, {transform_indices = @transform_3, window_bounds = array<i64: 1032, 128>}]} {
    %c0 = arith.constant 0 : index
    %c0_0 = arith.constant 0 : index
    %0 = vector.load %arg1[%c0, %c0_0] : memref<1032x128xf32, #tpu.memory_space<vmem>>, vector<1032x128xf32>
    %c0_1 = arith.constant 0 : index
    %c0_2 = arith.constant 0 : index
    %1 = vector.load %arg2[%c0_1, %c0_2] : memref<1x128xf32, #tpu.memory_space<vmem>>, vector<1x128xf32>
    %2 = vector.broadcast %1 : vector<1x128xf32> to vector<1032x128xf32>
    %3 = arith.mulf %0, %2 : vector<1032x128xf32>
    %c0_3 = arith.constant 0 : index
    %c0_4 = arith.constant 0 : index
    %4 = vector.load %arg3[%c0_3, %c0_4] : memref<1x128xf32, #tpu.memory_space<vmem>>, vector<1x128xf32>
    %5 = vector.broadcast %4 : vector<1x128xf32> to vector<1032x128xf32>
    %6 = arith.addf %3, %5 : vector<1032x128xf32>
    %c0_5 = arith.constant 0 : index
    %c0_6 = arith.constant 0 : index
    %7 = vector.load %arg4[%c0_5, %c0_6] : memref<1032x128xf32, #tpu.memory_space<vmem>>, vector<1032x128xf32>
    tpu.vector_store %arg4[%c0_5, %c0_6], %6 {strides = array<i32>} : memref<1032x128xf32, #tpu.memory_space<vmem>>, vector<1032x128xf32>,
    return
  }
  func.func @transform_0(%arg0: i32) -> (i32, i32) {
    %c0_i32 = arith.constant 0 : i32
    %c0_i32_0 = arith.constant 0 : i32
    return %arg0, %c0_i32 : i32, i32
  }
  func.func @transform_1(%arg0: i32) -> (i32, i32) {
    %c0_i32 = arith.constant 0 : i32
    %c0_i32_0 = arith.constant 0 : i32
    %c0_i32_1 = arith.constant 0 : i32
    return %c0_i32, %c0_i32_0 : i32, i32
  }
  func.func @transform_2(%arg0: i32) -> (i32, i32) {
    %c0_i32 = arith.constant 0 : i32
    %c0_i32_0 = arith.constant 0 : i32
    %c0_i32_1 = arith.constant 0 : i32
    return %c0_i32, %c0_i32_0 : i32, i32
  }
  func.func @transform_3(%arg0: i32) -> (i32, i32) {
    %c0_i32 = arith.constant 0 : i32
    %c0_i32_0 = arith.constant 0 : i32
    return %arg0, %c0_i32 : i32, i32
  }
}

</mosaic_0001>

<bundles_post_ra>
// kernel: tpu_custom_call.1
= control target key start
LH: loop header
LB: loop body
LE: loop exit
PB: predicated region body
PF: predicated region fallthrough
CT: control target
= control target key end

     0   :  { %8 = vsyncpa [#allocation3], 0  ;;  %s1879_s0 = inlined_call_operand.hbm [shape: f32[2049,128], index: 0, kind: input, shape index: {}]   ;;  %s1880_s1 = inlined_call_operand.hbm [shape: f32[1,128], index: 1, kind: input, shape index: {}]   ;;  %s1881_s2 = inlined_call_operand.hbm [shape: f32[1,128], index: 2, kind: input, shape index: {}]   ;;  %s1882_s3 = inlined_call_operand.hbm [shape: f32[2049,128], index: 3, kind: output, shape index: {}]  }
   0x1   :  { %10 = vsyncpa [#allocation3 + $0x1], 0 }
   0x2   :  { %11 = vsyncpa [#allocation6], 0 }
   0x3   :  { %12 = vsyncpa [#allocation4], 0 }
   0x4   :  { %14 = vsyncpa [#allocation4 + $0x1], 0  ;;  %s1139_s12 = smov 0   ;;  %s1141_s13 = smov 0  }
   0x5   :  { %s1143_s14 = smov 0   ;;  %s1145_s15 = smov 0  }
   0x6 LB: > { %s1160_s16 = sadd.s32 4294967295, %s1109_s15   ;;  %s872_s17 = sadd.s32 4294967294, %s1109_s15   ;;  %s1109_s15 = sphi %s1145_s15, %s1901_s15   ;;  %s1105_s14 = sphi %s1143_s14, %s1900_s14   ;;  %s1101_s13 = sphi %s1141_s13, %s1899_s13   ;;  %s1097_s12 = sphi %s1139_s12, %s1898_s12  }
   0x7   : > { %s1164_s18 = sadd.s32 1, %s1109_s15   ;;  %s27_s19 = sadd.s32 1, %s1105_s14 }
   0x8   : > { %s24_s20 = ssub.s32 %s1109_s15, %s1164_s18  ;;  %p34_p0 = scmp.ne.s32.totalorder %s1105_s14, %s1101_s13 }
   0x9   : > { %p25_p1 = scmp.eq.s32.totalorder %s24_s20, 0  ;;  %p35_p2 = scmp.eq.s32.totalorder %s1109_s15, 0 }
   0xa   : > { %p40_p3 = scmp.ne.s32.totalorder %s1101_s13, %s1097_s12  ;;  %p1883_p4 = scmp.eq.s32.totalorder %s1160_s16, 0 }
   0xb   : > { %s1176_s21 = scalar_select %p25_p1, %s1105_s14, %s27_s19  }
   0xc   : > { %p1178_p5 = por %p35_p2, %p34_p0  ;;  %p1184_p6 = por %p1883_p4, %p40_p3 }
   0xd   : > { %p106_p7 = scmp.eq.s32.totalorder %s1160_s16, 1  ;;  %p112_p8 = scmp.eq.s32.totalorder %s872_s17, 1 }
   0xe   : > { %s1887_s23 = scalar_select %p1184_p6, 1, 0 }
   0xf   : > { %p873_p9 = scmp.ge.s32.totalorder %s1109_s15, 1  ;;  %p119_p10 = scmp.lt.s32.totalorder %s1109_s15, 3 }
  0x10   : > { %p1191_p11 = por %p106_p7, %p34_p0  ;;  %p1195_p12 = por %p112_p8, %p40_p3 }
  0x11   : > { %p1199_p13 = pnand %p873_p9, %p119_p10  ;;  %s1111_s27 = smov [#allocation5]  }
  0x12   : > { %s1888_s24 = scalar_select %p1191_p11, 1, 0 }
  0x13   : > { %s1889_s25 = scalar_select %p1195_p12, 1, 0 }
  0x14   : > { %s1890_s26 = scalar_select %p1199_p13, 1, 0 }
  0x15   : > { %p908_p1 = pneg %p1199_p13  ;;  %s132_s28 = sshll.u32 %s1111_s27, 4  ;;  %s133_s28 = int_to_ptr.vmem [resolvable:$true] %s132_s28 }
  0x16   : > { %s1112_s29 = smov [#allocation7]   ;;  %s974_s5 = scalar_lea.vmem %s133_s28, 16 }
  0x17   : > { %s143_s30 = sshll.u32 %s1112_s29, 4  ;;  %p1207_p0 = pnand %p908_p1, %p1883_p4  ;;  %s144_s30 = int_to_ptr.vmem [resolvable:$true] %s143_s30 }
  0x18   : > { %p975_p3 = scmp.ne.s32.totalorder %s133_s28, %s974_s5  ;;  %s981_s6 = scalar_lea.vmem %s133_s28, 32 }
  0x19   : > { %p965_p2 = pneg %p1207_p0  ;;  %p982_p9 = scmp.lt.s32.totalorder %s133_s28, %s133_s28 }
  0x1a   : > { %p983_p10 = scmp.lt.s32.totalorder %s981_s6, %s974_s5 }
  0x1b   : > { %p977_p7 = pnand %p975_p3, %p965_p2 }
  0x1c   : > { %p984_p12 = por %p983_p10, %p982_p9 }
  0x1d   : > { %p978_p8 = pneg %p977_p7 }
  0x1f   : > { %p985_p11 = pnand %p984_p12, %p978_p8 }
  0x21   : > { %988 = shalt.err (!%p985_p11)
}
  0x22   : > { %911 = dma.hbm_to_vmem [thread:$0]  (!%p1207_p0), %s1880_s1, 16, %s133_s28, [#allocation6]  }
  0x23   : > { %s1000_s9 = scalar_lea.vmem %s144_s30, 16  ;;  %s1007_s10 = scalar_lea.vmem %s144_s30, 32 }
  0x24   : > { %p1001_p1 = scmp.ne.s32.totalorder %s144_s30, %s1000_s9  ;;  %p1008_p7 = scmp.lt.s32.totalorder %s144_s30, %s144_s30 }
  0x25   : > { %p1009_p6 = scmp.lt.s32.totalorder %s1007_s10, %s1000_s9 }
  0x26   : > { %p1003_p4 = pnand %p1001_p1, %p965_p2 }
  0x27   : > { %p1010_p13 = por %p1009_p6, %p1008_p7 }
  0x28   : > { %p1004_p3 = pneg %p1003_p4 }
  0x2a   : > { %p1011_p9 = pnand %p1010_p13, %p1004_p3 }
  0x2c   : > { %1014 = shalt.err (!%p1011_p9)
}
  0x2d   : > { %914 = dma.hbm_to_vmem [thread:$0]  (!%p1207_p0), %s1881_s2, 16, %s144_s30, [#allocation6]  }
  0x2e   : > { %p876_p11 = scmp.ge.s32.totalorder %s1109_s15, 2 }
  0x30   : > { %150 = sbr.rel (%p876_p11) target bundleno = 87 (0x57), region = 24 }
  0x35   : > { %153 = sbr.rel (!%p1178_p5) target bundleno = 87 (0x57), region = 28  ;;  %s154_s19 = sand.u32 (%p1178_p5), 1, %s1105_s14  }
  0x36   : > { %s159_s20 = smul.u32 (%p1178_p5), 129, %s1109_s15  ;;  %s1239_s4 = scalar_lea.sflag (%p1178_p5), [#allocation3], %s154_s19 }
  0x37   : > { %s896_s27 = smul.u32 (%p1178_p5), 1032, %s154_s19 }
  0x38   : > { %s160_s28 = ssub.s32 (%p1178_p5), 257, %s159_s20 }
  0x39   : > { %p161_p4 = scmp.lt.s32.totalorder (%p1178_p5), %s160_s28, 129  ;;  %s158_s5 = scalar_lea.vmem (%p1178_p5), [#allocation2], %s896_s27 }
  0x3b   : > { %s1903_s28 = smov (!%p161_p4, %s160_s28), 129 }
  0x3c   : > { %s1236_s29 = sshll.u32 %s1903_s28, 7 }
  0x3d   : > { %s165_s30 = ssub.s32 16512, %s1236_s29 }
  0x3e   : > { %166 = vsyncadd %s1239_s4, %s165_s30  ;;  %p878_p5 = scmp.ne.s32.totalorder %s1236_s29, 0  ;;  %s894_s22 = smul.u32 16512, %s1109_s15 }
  0x3f   : > { %s171_s6 = sshll.u32 %s158_s5, 4  ;;  %s1019_s19 = scalar_lea.hbm %s1879_s0, 32896  ;;  %s1249_s6 = int_to_ptr.vmem [resolvable:$true] %s171_s6 }
  0x40   : > { %s1247_s9 = scalar_lea.hbm %s1879_s0, %s894_s22 }
  0x41   : > { %s1015_s10 = scalar_lea.hbm %s1247_s9, %s1236_s29  ;;  %p1020_p0 = scmp.lt.s32.totalorder %s1247_s9, %s1879_s0 }
  0x42   : > { %p1016_p6 = scmp.ne.s32.totalorder %s1247_s9, %s1015_s10  ;;  %p1021_p2 = scmp.lt.s32.totalorder %s1019_s19, %s1015_s10 }
  0x44   : > { %p1017_p12 = pnand %p1016_p6, %p878_p5  ;;  %p1022_p8 = por %p1021_p2, %p1020_p0 }
  0x46   : > { %p1018_p13 = pneg %p1017_p12 }
  0x48   : > { %p1023_p10 = pnand %p1022_p8, %p1018_p13 }
  0x4a   : > { %1026 = shalt.err (!%p1023_p10)
}
  0x4b   : > { %s1027_s28 = scalar_lea.vmem %s1249_s6, %s1236_s29  ;;  %s1113_s30 = smov [#allocation2]  }
  0x4c   : > { %p1028_p1 = scmp.ne.s32.totalorder %s1249_s6, %s1027_s28  ;;  %s1031_s5 = sshll.u32 %s1113_s30, 4  ;;  %s1032_s5 = int_to_ptr.vmem [resolvable:$false] %s1031_s5 }
  0x4d   : > { %s1033_s22 = scalar_lea.vmem %s1032_s5, 33024  ;;  %p1034_p9 = scmp.lt.s32.totalorder %s1249_s6, %s1032_s5 }
  0x4e   : > { %p1029_p3 = pnand %p1028_p1, %p878_p5  ;;  %p1035_p4 = scmp.lt.s32.totalorder %s1033_s22, %s1027_s28 }
  0x50   : > { %p1030_p7 = pneg %p1029_p3  ;;  %p1036_p6 = por %p1035_p4, %p1034_p9 }
  0x52   : > { %p1037_p12 = pnand %p1036_p6, %p1030_p7 }
  0x54   : > { %1040 = shalt.err (!%p1037_p12)
}
  0x55   : > { %s1114_s7 = smov 128   ;;  %s1115_s8 = smov 8  }
  0x56   : > { %177 = dma.hbm_to_vmem [thread:$0]  (%p878_p5), %s1247_s9, %s1236_s29, %s1249_s6, %s1239_s4, %s1114_s7, %s1114_s7, %s1115_s8  }
  0x57 PF: > { %p1892_p13 = scmp.ne.s32.totalorder %s1890_s26, 0 }
  0x58   : > { %s1278_s10 = sand.u32 (!%p1892_p13), 1, %s1101_s13   ;;  %p1893_p0 = scmp.ne.s32.totalorder (!%p1892_p13), %s1887_s23, 0 }
  0x59   : > { %183 = sbr.rel (%p1892_p13) target bundleno = 207 (0xcf), region = 32  ;;  %s186_s17 = scalar_lea.sflag (!%p1892_p13), [#allocation3], %s1278_s10 }
  0x5a   : > { %s897_s11 = smul.u32 (!%p1892_p13), 1032, %s1278_s10 }
  0x5c   : > { %s1284_s19 = scalar_lea.vmem (!%p1892_p13), [#allocation2], %s897_s11 }
  0x5e   : > { %1084 = dma.done.wait (%p1893_p0), %s186_s17, 16512  }
  0x5f   : > { %1086 = vsyncadd (%p1893_p0), %s186_s17, 4294950784  ;;  %p1894_p5 = scmp.eq.s32.totalorder %s1160_s16, 0 }
  0x61   : > { %1088 = dma.done.wait (%p1894_p5), [#allocation6], 32   ;;  %p1895_p2 = pmov %p1894_p5 }
  0x62   : > { %v230_v0 = vld [vmem:[%s1284_s19] sm:$0xff]  ;;  %v1295_v1 = vld [vmem:[#allocation5] ss:$0 sm:$0xff]  ;;  %v1297_v2 = vld [vmem:[#allocation7] ss:$0 sm:$0xff]  ;;  %s1325_s23 = scalar_lea.vmem [#allocation8], %s897_s11 }
  0x63   : > { %1090 = vsyncadd (%p1895_p2), [#allocation6], 4294967264  ;;  %v366_v3 = vmul.f32 %v1295_v1, %v230_v0  ;;  %v231_v4 = vld [vmem:[%s1284_s19 + $0x8] sm:$0xff]  ;;  %v232_v5 = vld [vmem:[%s1284_s19 + $0x10] sm:$0xff]  ;;  %s761_s26 = scalar_lea.sflag [#allocation4], %s1278_s10  ;;  %p1896_p8 = scmp.ne.s32.totalorder %s1888_s24, 0 }
  0x64   : > { %v233_v6 = vld [vmem:[%s1284_s19 + $0x18] sm:$0xff]  ;;  %v367_v7 = vmul.f32 %v1295_v1, %v231_v4  ;;  %v368_v8 = vmul.f32 %v1295_v1, %v232_v5  ;;  %v234_v10 = vld [vmem:[%s1284_s19 + $0x20] sm:$0xff]  ;;  %v235_v11 = vld [vmem:[%s1284_s19 + $0x28] sm:$0xff]  ;;  %s768_s29 = smul.u32 (%p1896_p8), 129, %s1160_s16 }
  0x65   : > { %v369_v9 = vmul.f32 %v1295_v1, %v233_v6  ;;  %v236_v12 = vld [vmem:[%s1284_s19 + $0x30] sm:$0xff]  ;;  %v502_v13 = vadd.f32 %v1297_v2, %v366_v3  ;;  %v370_v14 = vmul.f32 %v1295_v1, %v234_v10  ;;  %v371_v15 = vmul.f32 %v1295_v1, %v235_v11  ;;  %v237_v17 = vld [vmem:[%s1284_s19 + $0x38] sm:$0xff]  ;;  %v238_v18 = vld [vmem:[%s1284_s19 + $0x40] sm:$0xff] }
  0x66   : > { %v372_v16 = vmul.f32 %v1295_v1, %v236_v12  ;;  %v239_v19 = vld [vmem:[%s1284_s19 + $0x48] sm:$0xff]  ;;  %v503_v20 = vadd.f32 %v1297_v2, %v367_v7  ;;  %v504_v21 = vadd.f32 %v1297_v2, %v368_v8  ;;  %v373_v23 = vmul.f32 %v1295_v1, %v237_v17  ;;  %v240_v24 = vld [vmem:[%s1284_s19 + $0x50] sm:$0xff]  ;;  %v241_v25 = vld [vmem:[%s1284_s19 + $0x58] sm:$0xff]  ;;  %s769_s4 = ssub.s32 (%p1896_p8), 257, %s768_s29 }
  0x67   : > { %v505_v22 = vadd.f32 %v1297_v2, %v369_v9  ;;  %v242_v26 = vld [vmem:[%s1284_s19 + $0x60] sm:$0xff]  ;;  %631 = vst [vmem:[%s1325_s23] sm:$0xff] %v502_v13  ;;  %v506_v27 = vadd.f32 %v1297_v2, %v370_v14  ;;  %v507_v28 = vadd.f32 %v1297_v2, %v371_v15  ;;  %v374_v30 = vmul.f32 %v1295_v1, %v238_v18  ;;  %v243_v31 = vld [vmem:[%s1284_s19 + $0x68] sm:$0xff]  ;;  %v244_v32 = vld [vmem:[%s1284_s19 + $0x70] sm:$0xff]  ;;  %p770_p10 = scmp.lt.s32.totalorder (%p1896_p8), %s769_s4, 129 }
  0x68   : > { %v508_v29 = vadd.f32 %v1297_v2, %v372_v16  ;;  %v245_v33 = vld [vmem:[%s1284_s19 + $0x78] sm:$0xff]  ;;  %632 = vst [vmem:[%s1325_s23 + $0x8] sm:$0xff] %v503_v20  ;;  %633 = vst [vmem:[%s1325_s23 + $0x10] sm:$0xff] %v504_v21  ;;  %v509_v34 = vadd.f32 %v1297_v2, %v373_v23  ;;  %v375_v35 = vmul.f32 %v1295_v1, %v239_v19  ;;  %v246_v38 = vld [vmem:[%s1284_s19 + $0x80] sm:$0xff] }
  0x69   : > { %634 = vst [vmem:[%s1325_s23 + $0x18] sm:$0xff] %v505_v22  ;;  %v376_v36 = vmul.f32 %v1295_v1, %v240_v24  ;;  %v377_v37 = vmul.f32 %v1295_v1, %v241_v25  ;;  %635 = vst [vmem:[%s1325_s23 + $0x20] sm:$0xff] %v506_v27  ;;  %v510_v39 = vadd.f32 %v1297_v2, %v374_v30  ;;  %v247_v43 = vld [vmem:[%s1284_s19 + $0x88] sm:$0xff]  ;;  %v248_v44 = vld [vmem:[%s1284_s19 + $0x90] sm:$0xff] }
  0x6a   : > { %636 = vst [vmem:[%s1325_s23 + $0x28] sm:$0xff] %v507_v28  ;;  %637 = vst [vmem:[%s1325_s23 + $0x30] sm:$0xff] %v508_v29  ;;  %v378_v40 = vmul.f32 %v1295_v1, %v242_v26  ;;  %v379_v41 = vmul.f32 %v1295_v1, %v243_v31  ;;  %v380_v42 = vmul.f32 %v1295_v1, %v244_v32  ;;  %v249_v45 = vld [vmem:[%s1284_s19 + $0x98] sm:$0xff]  ;;  %v250_v50 = vld [vmem:[%s1284_s19 + $0xa0] sm:$0xff] }
  0x6b   : > { %638 = vst [vmem:[%s1325_s23 + $0x38] sm:$0xff] %v509_v34  ;;  %v511_v46 = vadd.f32 %v1297_v2, %v375_v35  ;;  %v512_v47 = vadd.f32 %v1297_v2, %v376_v36  ;;  %v513_v48 = vadd.f32 %v1297_v2, %v377_v37  ;;  %v381_v49 = vmul.f32 %v1295_v1, %v245_v33  ;;  %v251_v51 = vld [vmem:[%s1284_s19 + $0xa8] sm:$0xff]  ;;  %v252_v52 = vld [vmem:[%s1284_s19 + $0xb0] sm:$0xff]  ;;  %v253_v57 = vld [vmem:[%s1284_s19 + $0xb8] sm:$0xff] }
  0x6c   : > { %639 = vst [vmem:[%s1325_s23 + $0x40] sm:$0xff] %v510_v39  ;;  %v514_v53 = vadd.f32 %v1297_v2, %v378_v40  ;;  %v515_v54 = vadd.f32 %v1297_v2, %v379_v41  ;;  %v516_v55 = vadd.f32 %v1297_v2, %v380_v42  ;;  %v382_v56 = vmul.f32 %v1295_v1, %v246_v38  ;;  %v254_v62 = vld [vmem:[%s1284_s19 + $0xc0] sm:$0xff]  ;;  %v255_v5 = vld [vmem:[%s1284_s19 + $0xc8] sm:$0xff]  ;;  %v256_v6 = vld [vmem:[%s1284_s19 + $0xd0] sm:$0xff] }
  0x6d   : > { %640 = vst [vmem:[%s1325_s23 + $0x48] sm:$0xff] %v511_v46  ;;  %641 = vst [vmem:[%s1325_s23 + $0x50] sm:$0xff] %v512_v47  ;;  %v517_v58 = vadd.f32 %v1297_v2, %v381_v49  ;;  %v383_v59 = vmul.f32 %v1295_v1, %v247_v43  ;;  %v384_v60 = vmul.f32 %v1295_v1, %v248_v44  ;;  %v257_v7 = vld [vmem:[%s1284_s19 + $0xd8] sm:$0xff]  ;;  %v258_v12 = vld [vmem:[%s1284_s19 + $0xe0] sm:$0xff] }
  0x6e   : > { %642 = vst [vmem:[%s1325_s23 + $0x58] sm:$0xff] %v513_v48  ;;  %v385_v61 = vmul.f32 %v1295_v1, %v249_v45  ;;  %643 = vst [vmem:[%s1325_s23 + $0x60] sm:$0xff] %v514_v53  ;;  %v518_v63 = vadd.f32 %v1297_v2, %v382_v56  ;;  %v386_v0 = vmul.f32 %v1295_v1, %v250_v50  ;;  %v259_v13 = vld [vmem:[%s1284_s19 + $0xe8] sm:$0xff]  ;;  %v260_v14 = vld [vmem:[%s1284_s19 + $0xf0] sm:$0xff] }
  0x6f   : > { %644 = vst [vmem:[%s1325_s23 + $0x68] sm:$0xff] %v515_v54  ;;  %645 = vst [vmem:[%s1325_s23 + $0x70] sm:$0xff] %v516_v55  ;;  %v387_v3 = vmul.f32 %v1295_v1, %v251_v51  ;;  %v388_v4 = vmul.f32 %v1295_v1, %v252_v52  ;;  %v519_v8 = vadd.f32 %v1297_v2, %v383_v59  ;;  %v261_v19 = vld [vmem:[%s1284_s19 + $0xf8] sm:$0xff]  ;;  %v262_v24 = vld [vmem:[%s1284_s19 + $0x100] sm:$0xff] }
  0x70   : > { %646 = vst [vmem:[%s1325_s23 + $0x78] sm:$0xff] %v517_v58  ;;  %v520_v9 = vadd.f32 %v1297_v2, %v384_v60  ;;  %v521_v10 = vadd.f32 %v1297_v2, %v385_v61  ;;  %v389_v11 = vmul.f32 %v1295_v1, %v253_v57  ;;  %647 = vst [vmem:[%s1325_s23 + $0x80] sm:$0xff] %v518_v63  ;;  %v263_v29 = vld [vmem:[%s1284_s19 + $0x108] sm:$0xff]  ;;  %v264_v30 = vld [vmem:[%s1284_s19 + $0x110] sm:$0xff] }
  0x71   : > { %v522_v15 = vadd.f32 %v1297_v2, %v386_v0  ;;  %v523_v16 = vadd.f32 %v1297_v2, %v387_v3  ;;  %v524_v17 = vadd.f32 %v1297_v2, %v388_v4  ;;  %v390_v18 = vmul.f32 %v1295_v1, %v254_v62  ;;  %648 = vst [vmem:[%s1325_s23 + $0x88] sm:$0xff] %v519_v8  ;;  %v265_v31 = vld [vmem:[%s1284_s19 + $0x118] sm:$0xff]  ;;  %v266_v36 = vld [vmem:[%s1284_s19 + $0x120] sm:$0xff]  ;;  %v267_v37 = vld [vmem:[%s1284_s19 + $0x128] sm:$0xff] }
  0x72   : > { %649 = vst [vmem:[%s1325_s23 + $0x90] sm:$0xff] %v520_v9  ;;  %650 = vst [vmem:[%s1325_s23 + $0x98] sm:$0xff] %v521_v10  ;;  %v525_v20 = vadd.f32 %v1297_v2, %v389_v11  ;;  %v391_v21 = vmul.f32 %v1295_v1, %v255_v5  ;;  %v392_v22 = vmul.f32 %v1295_v1, %v256_v6  ;;  %v268_v38 = vld [vmem:[%s1284_s19 + $0x130] sm:$0xff]  ;;  %v269_v43 = vld [vmem:[%s1284_s19 + $0x138] sm:$0xff] }
  0x73   : > { %v393_v23 = vmul.f32 %v1295_v1, %v257_v7  ;;  %651 = vst [vmem:[%s1325_s23 + $0xa0] sm:$0xff] %v522_v15  ;;  %652 = vst [vmem:[%s1325_s23 + $0xa8] sm:$0xff] %v523_v16  ;;  %v526_v25 = vadd.f32 %v1297_v2, %v390_v18  ;;  %v394_v26 = vmul.f32 %v1295_v1, %v258_v12  ;;  %v270_v48 = vld [vmem:[%s1284_s19 + $0x140] sm:$0xff]  ;;  %v271_v53 = vld [vmem:[%s1284_s19 + $0x148] sm:$0xff] }
  0x74   : > { %653 = vst [vmem:[%s1325_s23 + $0xb0] sm:$0xff] %v524_v17  ;;  %v395_v27 = vmul.f32 %v1295_v1, %v259_v13  ;;  %v396_v28 = vmul.f32 %v1295_v1, %v260_v14  ;;  %654 = vst [vmem:[%s1325_s23 + $0xb8] sm:$0xff] %v525_v20  ;;  %v527_v32 = vadd.f32 %v1297_v2, %v391_v21  ;;  %v272_v54 = vld [vmem:[%s1284_s19 + $0x150] sm:$0xff]  ;;  %v273_v55 = vld [vmem:[%s1284_s19 + $0x158] sm:$0xff] }
  0x75   : > { %v528_v33 = vadd.f32 %v1297_v2, %v392_v22  ;;  %v529_v34 = vadd.f32 %v1297_v2, %v393_v23  ;;  %v397_v35 = vmul.f32 %v1295_v1, %v261_v19  ;;  %655 = vst [vmem:[%s1325_s23 + $0xc0] sm:$0xff] %v526_v25  ;;  %v530_v39 = vadd.f32 %v1297_v2, %v394_v26  ;;  %v274_v60 = vld [vmem:[%s1284_s19 + $0x160] sm:$0xff]  ;;  %v275_v61 = vld [vmem:[%s1284_s19 + $0x168] sm:$0xff]  ;;  %v276_v62 = vld [vmem:[%s1284_s19 + $0x170] sm:$0xff] }
  0x76   : > { %v531_v40 = vadd.f32 %v1297_v2, %v395_v27  ;;  %v532_v41 = vadd.f32 %v1297_v2, %v396_v28  ;;  %v398_v42 = vmul.f32 %v1295_v1, %v262_v24  ;;  %656 = vst [vmem:[%s1325_s23 + $0xc8] sm:$0xff] %v527_v32  ;;  %v399_v45 = vmul.f32 %v1295_v1, %v263_v29  ;;  %v277_v5 = vld [vmem:[%s1284_s19 + $0x178] sm:$0xff]  ;;  %v278_v10 = vld [vmem:[%s1284_s19 + $0x180] sm:$0xff]  ;;  %v279_v15 = vld [vmem:[%s1284_s19 + $0x188] sm:$0xff] }
  0x77   : > { %657 = vst [vmem:[%s1325_s23 + $0xd0] sm:$0xff] %v528_v33  ;;  %658 = vst [vmem:[%s1325_s23 + $0xd8] sm:$0xff] %v529_v34  ;;  %v533_v44 = vadd.f32 %v1297_v2, %v397_v35  ;;  %v400_v46 = vmul.f32 %v1295_v1, %v264_v30  ;;  %v401_v47 = vmul.f32 %v1295_v1, %v265_v31  ;;  %v280_v16 = vld [vmem:[%s1284_s19 + $0x190] sm:$0xff]  ;;  %v281_v17 = vld [vmem:[%s1284_s19 + $0x198] sm:$0xff] }
  0x78   : > { %659 = vst [vmem:[%s1325_s23 + $0xe0] sm:$0xff] %v530_v39  ;;  %660 = vst [vmem:[%s1325_s23 + $0xe8] sm:$0xff] %v531_v40  ;;  %v534_v49 = vadd.f32 %v1297_v2, %v398_v42  ;;  %v402_v50 = vmul.f32 %v1295_v1, %v266_v36  ;;  %v403_v51 = vmul.f32 %v1295_v1, %v267_v37  ;;  %v282_v22 = vld [vmem:[%s1284_s19 + $0x1a0] sm:$0xff]  ;;  %v283_v23 = vld [vmem:[%s1284_s19 + $0x1a8] sm:$0xff] }
  0x79   : > { %661 = vst [vmem:[%s1325_s23 + $0xf0] sm:$0xff] %v532_v41  ;;  %v404_v52 = vmul.f32 %v1295_v1, %v268_v38  ;;  %662 = vst [vmem:[%s1325_s23 + $0xf8] sm:$0xff] %v533_v44  ;;  %v535_v56 = vadd.f32 %v1297_v2, %v399_v45  ;;  %v536_v57 = vadd.f32 %v1297_v2, %v400_v46  ;;  %v284_v24 = vld [vmem:[%s1284_s19 + $0x1b0] sm:$0xff]  ;;  %v285_v29 = vld [vmem:[%s1284_s19 + $0x1b8] sm:$0xff] }
  0x7a   : > { %v537_v58 = vadd.f32 %v1297_v2, %v401_v47  ;;  %v405_v59 = vmul.f32 %v1295_v1, %v269_v43  ;;  %663 = vst [vmem:[%s1325_s23 + $0x100] sm:$0xff] %v534_v49  ;;  %v538_v63 = vadd.f32 %v1297_v2, %v402_v50  ;;  %v539_v0 = vadd.f32 %v1297_v2, %v403_v51  ;;  %v286_v34 = vld [vmem:[%s1284_s19 + $0x1c0] sm:$0xff]  ;;  %v287_v39 = vld [vmem:[%s1284_s19 + $0x1c8] sm:$0xff]  ;;  %v288_v40 = vld [vmem:[%s1284_s19 + $0x1d0] sm:$0xff] }
  0x7b   : > { %v540_v3 = vadd.f32 %v1297_v2, %v404_v52  ;;  %v406_v4 = vmul.f32 %v1295_v1, %v270_v48  ;;  %664 = vst [vmem:[%s1325_s23 + $0x108] sm:$0xff] %v535_v56  ;;  %665 = vst [vmem:[%s1325_s23 + $0x110] sm:$0xff] %v536_v57  ;;  %v407_v7 = vmul.f32 %v1295_v1, %v271_v53  ;;  %v289_v41 = vld [vmem:[%s1284_s19 + $0x1d8] sm:$0xff]  ;;  %v290_v46 = vld [vmem:[%s1284_s19 + $0x1e0] sm:$0xff] }
  0x7c   : > { %666 = vst [vmem:[%s1325_s23 + $0x118] sm:$0xff] %v537_v58  ;;  %v541_v6 = vadd.f32 %v1297_v2, %v405_v59  ;;  %v408_v8 = vmul.f32 %v1295_v1, %v272_v54  ;;  %v409_v9 = vmul.f32 %v1295_v1, %v273_v55  ;;  %667 = vst [vmem:[%s1325_s23 + $0x120] sm:$0xff] %v538_v63  ;;  %v291_v47 = vld [vmem:[%s1284_s19 + $0x1e8] sm:$0xff]  ;;  %v292_v48 = vld [vmem:[%s1284_s19 + $0x1f0] sm:$0xff] }
  0x7d   : > { %668 = vst [vmem:[%s1325_s23 + $0x128] sm:$0xff] %v539_v0  ;;  %669 = vst [vmem:[%s1325_s23 + $0x130] sm:$0xff] %v540_v3  ;;  %v542_v11 = vadd.f32 %v1297_v2, %v406_v4  ;;  %v410_v12 = vmul.f32 %v1295_v1, %v274_v60  ;;  %v411_v13 = vmul.f32 %v1295_v1, %v275_v61  ;;  %v293_v53 = vld [vmem:[%s1284_s19 + $0x1f8] sm:$0xff]  ;;  %v294_v58 = vld [vmem:[%s1284_s19 + $0x200] sm:$0xff] }
  0x7e   : > { %v412_v14 = vmul.f32 %v1295_v1, %v276_v62  ;;  %670 = vst [vmem:[%s1325_s23 + $0x138] sm:$0xff] %v541_v6  ;;  %v543_v18 = vadd.f32 %v1297_v2, %v407_v7  ;;  %v544_v19 = vadd.f32 %v1297_v2, %v408_v8  ;;  %v545_v20 = vadd.f32 %v1297_v2, %v409_v9  ;;  %v295_v63 = vld [vmem:[%s1284_s19 + $0x208] sm:$0xff]  ;;  %v296_v0 = vld [vmem:[%s1284_s19 + $0x210] sm:$0xff]  ;;  %v297_v3 = vld [vmem:[%s1284_s19 + $0x218] sm:$0xff] }
  0x7f   : > { %v413_v21 = vmul.f32 %v1295_v1, %v277_v5  ;;  %671 = vst [vmem:[%s1325_s23 + $0x140] sm:$0xff] %v542_v11  ;;  %v546_v25 = vadd.f32 %v1297_v2, %v410_v12  ;;  %v547_v26 = vadd.f32 %v1297_v2, %v411_v13  ;;  %v414_v28 = vmul.f32 %v1295_v1, %v278_v10  ;;  %v298_v8 = vld [vmem:[%s1284_s19 + $0x220] sm:$0xff]  ;;  %v299_v9 = vld [vmem:[%s1284_s19 + $0x228] sm:$0xff]  ;;  %v300_v10 = vld [vmem:[%s1284_s19 + $0x230] sm:$0xff] }
  0x80   : > { %v548_v27 = vadd.f32 %v1297_v2, %v412_v14  ;;  %672 = vst [vmem:[%s1325_s23 + $0x148] sm:$0xff] %v543_v18  ;;  %673 = vst [vmem:[%s1325_s23 + $0x150] sm:$0xff] %v544_v19  ;;  %v415_v31 = vmul.f32 %v1295_v1, %v279_v15  ;;  %v416_v32 = vmul.f32 %v1295_v1, %v280_v16  ;;  %v301_v15 = vld [vmem:[%s1284_s19 + $0x238] sm:$0xff] }
  0x81   : > { %674 = vst [vmem:[%s1325_s23 + $0x158] sm:$0xff] %v545_v20  ;;  %v549_v30 = vadd.f32 %v1297_v2, %v413_v21  ;;  %v417_v33 = vmul.f32 %v1295_v1, %v281_v17  ;;  %675 = vst [vmem:[%s1325_s23 + $0x160] sm:$0xff] %v546_v25  ;;  %v550_v35 = vadd.f32 %v1297_v2, %v414_v28  ;;  %v302_v20 = vld [vmem:[%s1284_s19 + $0x240] sm:$0xff]  ;;  %v303_v25 = vld [vmem:[%s1284_s19 + $0x248] sm:$0xff] }
  0x82   : > { %676 = vst [vmem:[%s1325_s23 + $0x168] sm:$0xff] %v547_v26  ;;  %677 = vst [vmem:[%s1325_s23 + $0x170] sm:$0xff] %v548_v27  ;;  %v418_v36 = vmul.f32 %v1295_v1, %v282_v22  ;;  %v419_v37 = vmul.f32 %v1295_v1, %v283_v23  ;;  %v420_v38 = vmul.f32 %v1295_v1, %v284_v24  ;;  %v304_v26 = vld [vmem:[%s1284_s19 + $0x250] sm:$0xff]  ;;  %v305_v27 = vld [vmem:[%s1284_s19 + $0x258] sm:$0xff] }
  0x83   : > { %678 = vst [vmem:[%s1325_s23 + $0x178] sm:$0xff] %v549_v30  ;;  %v551_v42 = vadd.f32 %v1297_v2, %v415_v31  ;;  %v552_v43 = vadd.f32 %v1297_v2, %v416_v32  ;;  %v553_v44 = vadd.f32 %v1297_v2, %v417_v33  ;;  %v421_v45 = vmul.f32 %v1295_v1, %v285_v29  ;;  %v306_v32 = vld [vmem:[%s1284_s19 + $0x260] sm:$0xff]  ;;  %v307_v33 = vld [vmem:[%s1284_s19 + $0x268] sm:$0xff] }
  0x84   : > { %679 = vst [vmem:[%s1325_s23 + $0x180] sm:$0xff] %v550_v35  ;;  %v554_v49 = vadd.f32 %v1297_v2, %v418_v36  ;;  %v555_v50 = vadd.f32 %v1297_v2, %v419_v37  ;;  %v556_v51 = vadd.f32 %v1297_v2, %v420_v38  ;;  %v422_v52 = vmul.f32 %v1295_v1, %v286_v34  ;;  %v308_v34 = vld [vmem:[%s1284_s19 + $0x270] sm:$0xff] }
  0x85   : > { %680 = vst [vmem:[%s1325_s23 + $0x188] sm:$0xff] %v551_v42  ;;  %681 = vst [vmem:[%s1325_s23 + $0x190] sm:$0xff] %v552_v43  ;;  %v557_v54 = vadd.f32 %v1297_v2, %v421_v45  ;;  %v423_v55 = vmul.f32 %v1295_v1, %v287_v39  ;;  %v424_v56 = vmul.f32 %v1295_v1, %v288_v40  ;;  %v309_v39 = vld [vmem:[%s1284_s19 + $0x278] sm:$0xff] }
  0x86   : > { %682 = vst [vmem:[%s1325_s23 + $0x198] sm:$0xff] %v553_v44  ;;  %v425_v57 = vmul.f32 %v1295_v1, %v289_v41  ;;  %683 = vst [vmem:[%s1325_s23 + $0x1a0] sm:$0xff] %v554_v49  ;;  %v558_v59 = vadd.f32 %v1297_v2, %v422_v52  ;;  %v426_v60 = vmul.f32 %v1295_v1, %v290_v46  ;;  %v310_v44 = vld [vmem:[%s1284_s19 + $0x280] sm:$0xff]  ;;  %v311_v49 = vld [vmem:[%s1284_s19 + $0x288] sm:$0xff] }
  0x87   : > { %684 = vst [vmem:[%s1325_s23 + $0x1a8] sm:$0xff] %v555_v50  ;;  %685 = vst [vmem:[%s1325_s23 + $0x1b0] sm:$0xff] %v556_v51  ;;  %v427_v61 = vmul.f32 %v1295_v1, %v291_v47  ;;  %v428_v62 = vmul.f32 %v1295_v1, %v292_v48  ;;  %v559_v4 = vadd.f32 %v1297_v2, %v423_v55  ;;  %v312_v50 = vld [vmem:[%s1284_s19 + $0x290] sm:$0xff]  ;;  %v313_v51 = vld [vmem:[%s1284_s19 + $0x298] sm:$0xff] }
  0x88   : > { %686 = vst [vmem:[%s1325_s23 + $0x1b8] sm:$0xff] %v557_v54  ;;  %v560_v5 = vadd.f32 %v1297_v2, %v424_v56  ;;  %v561_v6 = vadd.f32 %v1297_v2, %v425_v57  ;;  %v429_v7 = vmul.f32 %v1295_v1, %v293_v53  ;;  %687 = vst [vmem:[%s1325_s23 + $0x1c0] sm:$0xff] %v558_v59  ;;  %v314_v56 = vld [vmem:[%s1284_s19 + $0x2a0] sm:$0xff]  ;;  %v315_v57 = vld [vmem:[%s1284_s19 + $0x2a8] sm:$0xff] }
  0x89   : > { %v562_v11 = vadd.f32 %v1297_v2, %v426_v60  ;;  %v563_v12 = vadd.f32 %v1297_v2, %v427_v61  ;;  %v564_v13 = vadd.f32 %v1297_v2, %v428_v62  ;;  %v430_v14 = vmul.f32 %v1295_v1, %v294_v58  ;;  %688 = vst [vmem:[%s1325_s23 + $0x1c8] sm:$0xff] %v559_v4  ;;  %v316_v58 = vld [vmem:[%s1284_s19 + $0x2b0] sm:$0xff] }
  0x8a   : > { %689 = vst [vmem:[%s1325_s23 + $0x1d0] sm:$0xff] %v560_v5  ;;  %690 = vst [vmem:[%s1325_s23 + $0x1d8] sm:$0xff] %v561_v6  ;;  %v565_v16 = vadd.f32 %v1297_v2, %v429_v7  ;;  %v431_v17 = vmul.f32 %v1295_v1, %v295_v63  ;;  %v432_v18 = vmul.f32 %v1295_v1, %v296_v0  ;;  %v317_v63 = vld [vmem:[%s1284_s19 + $0x2b8] sm:$0xff]  ;;  %v318_v6 = vld [vmem:[%s1284_s19 + $0x2c0] sm:$0xff] }
  0x8b   : > { %v433_v19 = vmul.f32 %v1295_v1, %v297_v3  ;;  %691 = vst [vmem:[%s1325_s23 + $0x1e0] sm:$0xff] %v562_v11  ;;  %692 = vst [vmem:[%s1325_s23 + $0x1e8] sm:$0xff] %v563_v12  ;;  %v566_v21 = vadd.f32 %v1297_v2, %v430_v14  ;;  %v434_v22 = vmul.f32 %v1295_v1, %v298_v8  ;;  %v319_v11 = vld [vmem:[%s1284_s19 + $0x2c8] sm:$0xff]  ;;  %v320_v12 = vld [vmem:[%s1284_s19 + $0x2d0] sm:$0xff] }
  0x8c   : > { %693 = vst [vmem:[%s1325_s23 + $0x1f0] sm:$0xff] %v564_v13  ;;  %v435_v23 = vmul.f32 %v1295_v1, %v299_v9  ;;  %v436_v24 = vmul.f32 %v1295_v1, %v300_v10  ;;  %694 = vst [vmem:[%s1325_s23 + $0x1f8] sm:$0xff] %v565_v16  ;;  %v567_v28 = vadd.f32 %v1297_v2, %v431_v17  ;;  %v321_v13 = vld [vmem:[%s1284_s19 + $0x2d8] sm:$0xff] }
  0x8d   : > { %v568_v29 = vadd.f32 %v1297_v2, %v432_v18  ;;  %v569_v30 = vadd.f32 %v1297_v2, %v433_v19  ;;  %v437_v31 = vmul.f32 %v1295_v1, %v301_v15  ;;  %695 = vst [vmem:[%s1325_s23 + $0x200] sm:$0xff] %v566_v21  ;;  %v570_v35 = vadd.f32 %v1297_v2, %v434_v22  ;;  %v322_v18 = vld [vmem:[%s1284_s19 + $0x2e0] sm:$0xff]  ;;  %v323_v19 = vld [vmem:[%s1284_s19 + $0x2e8] sm:$0xff] }
  0x8e   : > { %v571_v36 = vadd.f32 %v1297_v2, %v435_v23  ;;  %v572_v37 = vadd.f32 %v1297_v2, %v436_v24  ;;  %v438_v38 = vmul.f32 %v1295_v1, %v302_v20  ;;  %696 = vst [vmem:[%s1325_s23 + $0x208] sm:$0xff] %v567_v28  ;;  %v439_v41 = vmul.f32 %v1295_v1, %v303_v25  ;;  %v324_v20 = vld [vmem:[%s1284_s19 + $0x2f0] sm:$0xff]  ;;  %v325_v25 = vld [vmem:[%s1284_s19 + $0x2f8] sm:$0xff] }
  0x8f   : > { %697 = vst [vmem:[%s1325_s23 + $0x210] sm:$0xff] %v568_v29  ;;  %698 = vst [vmem:[%s1325_s23 + $0x218] sm:$0xff] %v569_v30  ;;  %v573_v40 = vadd.f32 %v1297_v2, %v437_v31  ;;  %v440_v42 = vmul.f32 %v1295_v1, %v304_v26  ;;  %v441_v43 = vmul.f32 %v1295_v1, %v305_v27  ;;  %v326_v30 = vld [vmem:[%s1284_s19 + $0x300] sm:$0xff] }
  0x90   : > { %699 = vst [vmem:[%s1325_s23 + $0x220] sm:$0xff] %v570_v35  ;;  %700 = vst [vmem:[%s1325_s23 + $0x228] sm:$0xff] %v571_v36  ;;  %v574_v45 = vadd.f32 %v1297_v2, %v438_v38  ;;  %v442_v46 = vmul.f32 %v1295_v1, %v306_v32  ;;  %v443_v47 = vmul.f32 %v1295_v1, %v307_v33  ;;  %v327_v35 = vld [vmem:[%s1284_s19 + $0x308] sm:$0xff]  ;;  %v328_v36 = vld [vmem:[%s1284_s19 + $0x310] sm:$0xff] }
  0x91   : > { %701 = vst [vmem:[%s1325_s23 + $0x230] sm:$0xff] %v572_v37  ;;  %v444_v48 = vmul.f32 %v1295_v1, %v308_v34  ;;  %702 = vst [vmem:[%s1325_s23 + $0x238] sm:$0xff] %v573_v40  ;;  %v575_v52 = vadd.f32 %v1297_v2, %v439_v41  ;;  %v576_v53 = vadd.f32 %v1297_v2, %v440_v42  ;;  %v329_v37 = vld [vmem:[%s1284_s19 + $0x318] sm:$0xff]  ;;  %v330_v42 = vld [vmem:[%s1284_s19 + $0x320] sm:$0xff] }
  0x92   : > { %v577_v54 = vadd.f32 %v1297_v2, %v441_v43  ;;  %v445_v55 = vmul.f32 %v1295_v1, %v309_v39  ;;  %703 = vst [vmem:[%s1325_s23 + $0x240] sm:$0xff] %v574_v45  ;;  %v578_v59 = vadd.f32 %v1297_v2, %v442_v46  ;;  %v579_v60 = vadd.f32 %v1297_v2, %v443_v47  ;;  %v331_v43 = vld [vmem:[%s1284_s19 + $0x328] sm:$0xff] }
  0x93   : > { %v580_v61 = vadd.f32 %v1297_v2, %v444_v48  ;;  %v446_v62 = vmul.f32 %v1295_v1, %v310_v44  ;;  %704 = vst [vmem:[%s1325_s23 + $0x248] sm:$0xff] %v575_v52  ;;  %705 = vst [vmem:[%s1325_s23 + $0x250] sm:$0xff] %v576_v53  ;;  %v447_v3 = vmul.f32 %v1295_v1, %v311_v49  ;;  %v332_v44 = vld [vmem:[%s1284_s19 + $0x330] sm:$0xff]  ;;  %v333_v49 = vld [vmem:[%s1284_s19 + $0x338] sm:$0xff] }
  0x94   : > { %706 = vst [vmem:[%s1325_s23 + $0x258] sm:$0xff] %v577_v54  ;;  %v581_v0 = vadd.f32 %v1297_v2, %v445_v55  ;;  %v448_v4 = vmul.f32 %v1295_v1, %v312_v50  ;;  %v449_v5 = vmul.f32 %v1295_v1, %v313_v51  ;;  %707 = vst [vmem:[%s1325_s23 + $0x260] sm:$0xff] %v578_v59  ;;  %v334_v54 = vld [vmem:[%s1284_s19 + $0x340] sm:$0xff]  ;;  %v335_v59 = vld [vmem:[%s1284_s19 + $0x348] sm:$0xff] }
  0x95   : > { %708 = vst [vmem:[%s1325_s23 + $0x268] sm:$0xff] %v579_v60  ;;  %709 = vst [vmem:[%s1325_s23 + $0x270] sm:$0xff] %v580_v61  ;;  %v582_v7 = vadd.f32 %v1297_v2, %v446_v62  ;;  %v450_v8 = vmul.f32 %v1295_v1, %v314_v56  ;;  %v451_v9 = vmul.f32 %v1295_v1, %v315_v57  ;;  %v336_v60 = vld [vmem:[%s1284_s19 + $0x350] sm:$0xff]  ;;  %v337_v61 = vld [vmem:[%s1284_s19 + $0x358] sm:$0xff] }
  0x96   : > { %v452_v10 = vmul.f32 %v1295_v1, %v316_v58  ;;  %710 = vst [vmem:[%s1325_s23 + $0x278] sm:$0xff] %v581_v0  ;;  %v583_v14 = vadd.f32 %v1297_v2, %v447_v3  ;;  %v584_v15 = vadd.f32 %v1297_v2, %v448_v4  ;;  %v585_v16 = vadd.f32 %v1297_v2, %v449_v5  ;;  %v338_v4 = vld [vmem:[%s1284_s19 + $0x360] sm:$0xff]  ;;  %v339_v5 = vld [vmem:[%s1284_s19 + $0x368] sm:$0xff] }
  0x97   : > { %v453_v17 = vmul.f32 %v1295_v1, %v317_v63  ;;  %711 = vst [vmem:[%s1325_s23 + $0x280] sm:$0xff] %v582_v7  ;;  %v586_v21 = vadd.f32 %v1297_v2, %v450_v8  ;;  %v587_v22 = vadd.f32 %v1297_v2, %v451_v9  ;;  %v454_v24 = vmul.f32 %v1295_v1, %v318_v6  ;;  %v340_v6 = vld [vmem:[%s1284_s19 + $0x370] sm:$0xff] }
  0x98   : > { %v588_v23 = vadd.f32 %v1297_v2, %v452_v10  ;;  %712 = vst [vmem:[%s1325_s23 + $0x288] sm:$0xff] %v583_v14  ;;  %713 = vst [vmem:[%s1325_s23 + $0x290] sm:$0xff] %v584_v15  ;;  %v455_v27 = vmul.f32 %v1295_v1, %v319_v11  ;;  %v456_v28 = vmul.f32 %v1295_v1, %v320_v12  ;;  %v341_v11 = vld [vmem:[%s1284_s19 + $0x378] sm:$0xff] }
  0x99   : > { %714 = vst [vmem:[%s1325_s23 + $0x298] sm:$0xff] %v585_v16  ;;  %v589_v26 = vadd.f32 %v1297_v2, %v453_v17  ;;  %v457_v29 = vmul.f32 %v1295_v1, %v321_v13  ;;  %715 = vst [vmem:[%s1325_s23 + $0x2a0] sm:$0xff] %v586_v21  ;;  %v590_v31 = vadd.f32 %v1297_v2, %v454_v24  ;;  %v342_v16 = vld [vmem:[%s1284_s19 + $0x380] sm:$0xff]  ;;  %v343_v21 = vld [vmem:[%s1284_s19 + $0x388] sm:$0xff] }
  0x9a   : > { %716 = vst [vmem:[%s1325_s23 + $0x2a8] sm:$0xff] %v587_v22  ;;  %717 = vst [vmem:[%s1325_s23 + $0x2b0] sm:$0xff] %v588_v23  ;;  %v458_v32 = vmul.f32 %v1295_v1, %v322_v18  ;;  %v459_v33 = vmul.f32 %v1295_v1, %v323_v19  ;;  %v460_v34 = vmul.f32 %v1295_v1, %v324_v20  ;;  %v344_v22 = vld [vmem:[%s1284_s19 + $0x390] sm:$0xff]  ;;  %v345_v23 = vld [vmem:[%s1284_s19 + $0x398] sm:$0xff] }
  0x9b   : > { %718 = vst [vmem:[%s1325_s23 + $0x2b8] sm:$0xff] %v589_v26  ;;  %v591_v38 = vadd.f32 %v1297_v2, %v455_v27  ;;  %v592_v39 = vadd.f32 %v1297_v2, %v456_v28  ;;  %v593_v40 = vadd.f32 %v1297_v2, %v457_v29  ;;  %v461_v41 = vmul.f32 %v1295_v1, %v325_v25  ;;  %v346_v28 = vld [vmem:[%s1284_s19 + $0x3a0] sm:$0xff]  ;;  %v347_v29 = vld [vmem:[%s1284_s19 + $0x3a8] sm:$0xff] }
  0x9c   : > { %719 = vst [vmem:[%s1325_s23 + $0x2c0] sm:$0xff] %v590_v31  ;;  %v594_v45 = vadd.f32 %v1297_v2, %v458_v32  ;;  %v595_v46 = vadd.f32 %v1297_v2, %v459_v33  ;;  %v596_v47 = vadd.f32 %v1297_v2, %v460_v34  ;;  %v462_v48 = vmul.f32 %v1295_v1, %v326_v30  ;;  %v348_v30 = vld [vmem:[%s1284_s19 + $0x3b0] sm:$0xff] }
  0x9d   : > { %720 = vst [vmem:[%s1325_s23 + $0x2c8] sm:$0xff] %v591_v38  ;;  %721 = vst [vmem:[%s1325_s23 + $0x2d0] sm:$0xff] %v592_v39  ;;  %v597_v50 = vadd.f32 %v1297_v2, %v461_v41  ;;  %v463_v51 = vmul.f32 %v1295_v1, %v327_v35  ;;  %v464_v52 = vmul.f32 %v1295_v1, %v328_v36  ;;  %v349_v35 = vld [vmem:[%s1284_s19 + $0x3b8] sm:$0xff] }
  0x9e   : > { %722 = vst [vmem:[%s1325_s23 + $0x2d8] sm:$0xff] %v593_v40  ;;  %v465_v53 = vmul.f32 %v1295_v1, %v329_v37  ;;  %723 = vst [vmem:[%s1325_s23 + $0x2e0] sm:$0xff] %v594_v45  ;;  %v598_v55 = vadd.f32 %v1297_v2, %v462_v48  ;;  %v466_v56 = vmul.f32 %v1295_v1, %v330_v42  ;;  %v350_v40 = vld [vmem:[%s1284_s19 + $0x3c0] sm:$0xff]  ;;  %v351_v45 = vld [vmem:[%s1284_s19 + $0x3c8] sm:$0xff] }
  0x9f   : > { %724 = vst [vmem:[%s1325_s23 + $0x2e8] sm:$0xff] %v595_v46  ;;  %725 = vst [vmem:[%s1325_s23 + $0x2f0] sm:$0xff] %v596_v47  ;;  %v467_v57 = vmul.f32 %v1295_v1, %v331_v43  ;;  %v468_v58 = vmul.f32 %v1295_v1, %v332_v44  ;;  %v599_v62 = vadd.f32 %v1297_v2, %v463_v51  ;;  %v352_v46 = vld [vmem:[%s1284_s19 + $0x3d0] sm:$0xff]  ;;  %v353_v47 = vld [vmem:[%s1284_s19 + $0x3d8] sm:$0xff] }
  0xa0   : > { %726 = vst [vmem:[%s1325_s23 + $0x2f8] sm:$0xff] %v597_v50  ;;  %v600_v63 = vadd.f32 %v1297_v2, %v464_v52  ;;  %v601_v0 = vadd.f32 %v1297_v2, %v465_v53  ;;  %v469_v3 = vmul.f32 %v1295_v1, %v333_v49  ;;  %727 = vst [vmem:[%s1325_s23 + $0x300] sm:$0xff] %v598_v55  ;;  %v354_v52 = vld [vmem:[%s1284_s19 + $0x3e0] sm:$0xff]  ;;  %v355_v53 = vld [vmem:[%s1284_s19 + $0x3e8] sm:$0xff] }
  0xa1   : > { %v602_v7 = vadd.f32 %v1297_v2, %v466_v56  ;;  %v603_v8 = vadd.f32 %v1297_v2, %v467_v57  ;;  %v604_v9 = vadd.f32 %v1297_v2, %v468_v58  ;;  %v470_v10 = vmul.f32 %v1295_v1, %v334_v54  ;;  %728 = vst [vmem:[%s1325_s23 + $0x308] sm:$0xff] %v599_v62  ;;  %v356_v54 = vld [vmem:[%s1284_s19 + $0x3f0] sm:$0xff] }
  0xa2   : > { %729 = vst [vmem:[%s1325_s23 + $0x310] sm:$0xff] %v600_v63  ;;  %730 = vst [vmem:[%s1325_s23 + $0x318] sm:$0xff] %v601_v0  ;;  %v605_v12 = vadd.f32 %v1297_v2, %v469_v3  ;;  %v471_v13 = vmul.f32 %v1295_v1, %v335_v59  ;;  %v472_v14 = vmul.f32 %v1295_v1, %v336_v60  ;;  %v357_v59 = vld [vmem:[%s1284_s19 + $0x3f8] sm:$0xff]  ;;  %v358_v0 = vld [vmem:[%s1284_s19 + $0x400] sm:$0xff] }
  0xa3   : > { %v473_v15 = vmul.f32 %v1295_v1, %v337_v61  ;;  %731 = vst [vmem:[%s1325_s23 + $0x320] sm:$0xff] %v602_v7  ;;  %732 = vst [vmem:[%s1325_s23 + $0x328] sm:$0xff] %v603_v8  ;;  %v606_v17 = vadd.f32 %v1297_v2, %v470_v10  ;;  %v474_v18 = vmul.f32 %v1295_v1, %v338_v4 }
  0xa4   : > { %733 = vst [vmem:[%s1325_s23 + $0x330] sm:$0xff] %v604_v9  ;;  %v475_v19 = vmul.f32 %v1295_v1, %v339_v5  ;;  %v476_v20 = vmul.f32 %v1295_v1, %v340_v6  ;;  %734 = vst [vmem:[%s1325_s23 + $0x338] sm:$0xff] %v605_v12  ;;  %v607_v24 = vadd.f32 %v1297_v2, %v471_v13 }
  0xa5   : > { %v608_v25 = vadd.f32 %v1297_v2, %v472_v14  ;;  %v609_v26 = vadd.f32 %v1297_v2, %v473_v15  ;;  %v477_v27 = vmul.f32 %v1295_v1, %v341_v11  ;;  %735 = vst [vmem:[%s1325_s23 + $0x340] sm:$0xff] %v606_v17  ;;  %v610_v31 = vadd.f32 %v1297_v2, %v474_v18 }
  0xa6   : > { %v611_v32 = vadd.f32 %v1297_v2, %v475_v19  ;;  %v612_v33 = vadd.f32 %v1297_v2, %v476_v20  ;;  %v478_v34 = vmul.f32 %v1295_v1, %v342_v16  ;;  %736 = vst [vmem:[%s1325_s23 + $0x348] sm:$0xff] %v607_v24  ;;  %v479_v37 = vmul.f32 %v1295_v1, %v343_v21  ;;  %v962_v16 = vld [vmem:[#allocation7] ss:$0 sm:$0xff] }
  0xa7   : > { %737 = vst [vmem:[%s1325_s23 + $0x350] sm:$0xff] %v608_v25  ;;  %738 = vst [vmem:[%s1325_s23 + $0x358] sm:$0xff] %v609_v26  ;;  %v613_v36 = vadd.f32 %v1297_v2, %v477_v27  ;;  %v480_v38 = vmul.f32 %v1295_v1, %v344_v22  ;;  %v481_v39 = vmul.f32 %v1295_v1, %v345_v23 }
  0xa8   : > { %739 = vst [vmem:[%s1325_s23 + $0x360] sm:$0xff] %v610_v31  ;;  %740 = vst [vmem:[%s1325_s23 + $0x368] sm:$0xff] %v611_v32  ;;  %v614_v41 = vadd.f32 %v1297_v2, %v478_v34  ;;  %v482_v42 = vmul.f32 %v1295_v1, %v346_v28  ;;  %v483_v43 = vmul.f32 %v1295_v1, %v347_v29 }
  0xa9   : > { %741 = vst [vmem:[%s1325_s23 + $0x370] sm:$0xff] %v612_v33  ;;  %v484_v44 = vmul.f32 %v1295_v1, %v348_v30  ;;  %742 = vst [vmem:[%s1325_s23 + $0x378] sm:$0xff] %v613_v36  ;;  %v615_v48 = vadd.f32 %v1297_v2, %v479_v37  ;;  %v616_v49 = vadd.f32 %v1297_v2, %v480_v38 }
  0xaa   : > { %v617_v50 = vadd.f32 %v1297_v2, %v481_v39  ;;  %v485_v51 = vmul.f32 %v1295_v1, %v349_v35  ;;  %743 = vst [vmem:[%s1325_s23 + $0x380] sm:$0xff] %v614_v41  ;;  %v618_v55 = vadd.f32 %v1297_v2, %v482_v42  ;;  %v619_v56 = vadd.f32 %v1297_v2, %v483_v43 }
  0xab   : > { %v620_v57 = vadd.f32 %v1297_v2, %v484_v44  ;;  %v486_v58 = vmul.f32 %v1295_v1, %v350_v40  ;;  %744 = vst [vmem:[%s1325_s23 + $0x388] sm:$0xff] %v615_v48  ;;  %745 = vst [vmem:[%s1325_s23 + $0x390] sm:$0xff] %v616_v49  ;;  %v487_v61 = vmul.f32 %v1295_v1, %v351_v45 }
  0xac   : > { %746 = vst [vmem:[%s1325_s23 + $0x398] sm:$0xff] %v617_v50  ;;  %v621_v60 = vadd.f32 %v1297_v2, %v485_v51  ;;  %v488_v62 = vmul.f32 %v1295_v1, %v352_v46  ;;  %v489_v63 = vmul.f32 %v1295_v1, %v353_v47  ;;  %747 = vst [vmem:[%s1325_s23 + $0x3a0] sm:$0xff] %v618_v55 }
  0xad   : > { %748 = vst [vmem:[%s1325_s23 + $0x3a8] sm:$0xff] %v619_v56  ;;  %749 = vst [vmem:[%s1325_s23 + $0x3b0] sm:$0xff] %v620_v57  ;;  %v622_v3 = vadd.f32 %v1297_v2, %v486_v58  ;;  %v490_v4 = vmul.f32 %v1295_v1, %v354_v52  ;;  %v491_v5 = vmul.f32 %v1295_v1, %v355_v53 }
  0xae   : > { %v492_v6 = vmul.f32 %v1295_v1, %v356_v54  ;;  %750 = vst [vmem:[%s1325_s23 + $0x3b8] sm:$0xff] %v621_v60  ;;  %v623_v7 = vadd.f32 %v1297_v2, %v487_v61  ;;  %v624_v8 = vadd.f32 %v1297_v2, %v488_v62  ;;  %v625_v9 = vadd.f32 %v1297_v2, %v489_v63 }
  0xaf   : > { %v493_v10 = vmul.f32 %v1295_v1, %v357_v59  ;;  %751 = vst [vmem:[%s1325_s23 + $0x3c0] sm:$0xff] %v622_v3  ;;  %v626_v11 = vadd.f32 %v1297_v2, %v490_v4  ;;  %v627_v12 = vadd.f32 %v1297_v2, %v491_v5  ;;  %v494_v14 = vmul.f32 %v1295_v1, %v358_v0  ;;  %767 = sbr.rel (!%p1896_p8) target bundleno = 207 (0xcf), region = 48 }
  0xb0   : > { %v628_v13 = vadd.f32 %v1297_v2, %v492_v6  ;;  %752 = vst [vmem:[%s1325_s23 + $0x3c8] sm:$0xff] %v623_v7  ;;  %753 = vst [vmem:[%s1325_s23 + $0x3d0] sm:$0xff] %v624_v8 }
  0xb1   : > { %754 = vst [vmem:[%s1325_s23 + $0x3d8] sm:$0xff] %v625_v9  ;;  %v629_v15 = vadd.f32 %v1297_v2, %v493_v10  ;;  %755 = vst [vmem:[%s1325_s23 + $0x3e0] sm:$0xff] %v626_v11  ;;  %v630_v17 = vadd.f32 %v962_v16, %v494_v14 }
  0xb2   : > { %756 = vst [vmem:[%s1325_s23 + $0x3e8] sm:$0xff] %v627_v12  ;;  %757 = vst [vmem:[%s1325_s23 + $0x3f0] sm:$0xff] %v628_v13 }
  0xb3   : > { %758 = vst [vmem:[%s1325_s23 + $0x3f8] sm:$0xff] %v629_v15  ;;  %759 = vst [vmem:[%s1325_s23 + $0x400] sm:$0xff] %v630_v17 }
  0xb4   : > { %s1905_s4 = smov (!%p770_p10, %s769_s4), 129 }
  0xb5   : > { %s1821_s6 = sshll.u32 %s1905_s4, 7 }
  0xb6   : > { %s774_s9 = ssub.s32 16512, %s1821_s6 }
  0xb7   : > { %775 = vsyncadd %s761_s26, %s774_s9  ;;  %p888_p1 = scmp.ne.s32.totalorder %s1821_s6, 0  ;;  %s895_s24 = smul.u32 16512, %s1160_s16 }
  0xb8   : > { %s780_s20 = sshll.u32 %s1325_s23, 4  ;;  %s1116_s22 = smov [#allocation8]   ;;  %s1834_s20 = int_to_ptr.vmem [resolvable:$true] %s780_s20 }
  0xb9   : > { %s1832_s30 = scalar_lea.hbm %s1882_s3, %s895_s24  ;;  %s1041_s5 = scalar_lea.vmem %s1834_s20, %s1821_s6 }
  0xba   : > { %p1042_p3 = scmp.ne.s32.totalorder %s1834_s20, %s1041_s5  ;;  %s1045_s7 = sshll.u32 %s1116_s22, 4  ;;  %s1046_s7 = int_to_ptr.vmem [resolvable:$false] %s1045_s7 }
  0xbb   : > { %s1047_s16 = scalar_lea.vmem %s1046_s7, 33024  ;;  %p1048_p4 = scmp.lt.s32.totalorder %s1834_s20, %s1046_s7 }
  0xbc   : > { %p1043_p7 = pnand %p1042_p3, %p888_p1  ;;  %p1049_p6 = scmp.lt.s32.totalorder %s1047_s16, %s1041_s5 }
  0xbe   : > { %p1044_p9 = pneg %p1043_p7  ;;  %p1050_p12 = por %p1049_p6, %p1048_p4 }
  0xc0   : > { %p1051_p13 = pnand %p1050_p12, %p1044_p9 }
  0xc2   : > { %1054 = shalt.err (!%p1051_p13)
}
  0xc3   : > { %s1055_s8 = scalar_lea.hbm %s1832_s30, %s1821_s6  ;;  %s1059_s19 = scalar_lea.hbm %s1882_s3, 32896 }
  0xc4   : > { %p1056_p0 = scmp.ne.s32.totalorder %s1832_s30, %s1055_s8  ;;  %p1060_p8 = scmp.lt.s32.totalorder %s1832_s30, %s1882_s3 }
  0xc5   : > { %p1061_p10 = scmp.lt.s32.totalorder %s1059_s19, %s1055_s8 }
  0xc6   : > { %p1057_p5 = pnand %p1056_p0, %p888_p1 }
  0xc7   : > { %p1062_p3 = por %p1061_p10, %p1060_p8 }
  0xc8   : > { %p1058_p2 = pneg %p1057_p5 }
  0xca   : > { %p1063_p7 = pnand %p1062_p3, %p1058_p2 }
  0xcc   : > { %1066 = shalt.err (!%p1063_p7)
}
  0xcd   : > { %s1117_s4 = smov 128   ;;  %s1118_s9 = smov 8  }
  0xce   : > { %786 = dma.vmem_to_hbm [thread:$0]  (%p888_p1), %s1834_s20, %s1821_s6, %s1832_s30, %s761_s26, %s1117_s4, %s1117_s4, %s1118_s9  }
  0xcf PF: > { %s795_s24 = sand.u32 1, %s1097_s12   ;;  %p1897_p9 = scmp.ne.s32.totalorder %s1889_s25, 0 }
  0xd0   : > { %s796_s27 = scalar_lea.sflag [#allocation4], %s795_s24 }
  0xd1   : > { %p916_p4 = pnand %p876_p11, %p1897_p9 }
  0xd3   : > { %p917_p6 = pneg %p916_p4 }
  0xd5   : > { %1092 = dma.done.wait (%p917_p6), %s796_s27, 16512  }
  0xd6   : > { %1094 = vsyncadd (%p917_p6), %s796_s27, 4294950784  ;;  %p17_p12 = scmp.ge.s32.totalorder %s1164_s18, 4   ;;  %s1898_s12 = smov %s1101_s13 }
  0xd7   : > { %s1899_s13 = smov %s1105_s14  ;;  %s1900_s14 = smov %s1176_s21 }
  0xd8   : > { %s1901_s15 = smov %s1164_s18  ;;  %19 = sbr.rel (!%p17_p12) target bundleno = 6 (0x6), region = 85 }
  0xdd   :  { %801 = vsyncpa [#allocation3], 1 }
  0xde   :  { %803 = vsyncpa [#allocation3 + $0x1], 1 }
  0xdf   :  { %804 = vsyncpa [#allocation6], 1 }
  0xe0   :  { %805 = vsyncpa [#allocation4], 1 }
  0xe1   :  { %807 = vsyncpa [#allocation4 + $0x1], 1 }

</bundles_post_ra>
